<compile_context>
chip_gen: v7x
topology: tpu7x:2x2x1
jax: 0.10.0
libtpu: 0.0.40
codegen_flags: <defaults>
</compile_context>

<pallas_src>
import jax
import jax.numpy as jnp
from jax.experimental import pallas as pl
from jax.experimental.pallas import tpu as pltpu

_LANE = 128
_SUBLANE_BF16 = 16          # bf16 packs 16 sublanes per vreg


def _round_up(n, m):
    return ((n + m - 1) // m) * m


def _cdiv(a, b):
    return -(-a // b)


def _pad_feature(s):
    """Lane padding for a logical feature width."""
    if s <= _LANE:
        return _LANE
    if s <= 2 * _LANE:
        return 2 * _LANE      # match the 2x256 MXU tile on v6e / v7x
    return _round_up(s, _LANE)


# ---------------------------------------------------------------------------
# Fused kernel: whole pyramid in one body, layer loop unrolled in Python.
# ---------------------------------------------------------------------------
def _make_fused_kernel(layer_meta, has_ws):
    """layer_meta: tuple of 'same' | 'half' | 'double' | 'none' per layer."""

    def kernel(*refs):
        o_ref = refs[-1]
        idx = 0
        ws_ref = None
        if has_ws:
            ws_ref = refs[0]          # SMEM (L,) weigth_skip (used by 'same')
            idx = 1

        x_lo = refs[idx][...]                    # bf16 [TB, p0] MXU operand
        x_hi = x_lo.astype(jnp.float32)          # f32 copy for VPU skip math
        idx += 1

        n_layers = len(layer_meta)
        for li, mode in enumerate(layer_meta):
            w_ref = refs[idx]
            b_ref = refs[idx + 1]
            idx += 2
            # bf16 x bf16 -> f32 accumulation on the MXU; bias/ReLU in f32.
            y = jnp.dot(x_lo, w_ref[...], preferred_element_type=jnp.float32)
            act = jnp.maximum(y + b_ref[...], 0.0)

            if mode == "same":
                x_hi = ws_ref[li] * x_hi + act
            elif mode in ("half", "double"):
                s_ref = refs[idx]                # bf16 skip matrix, ws pre-folded
                idx += 1
                skip = jnp.dot(x_lo, s_ref[...],
                               preferred_element_type=jnp.float32)
                x_hi = skip + act
            else:                                # plain dense / mismatch fallback
                x_hi = act

            if li + 1 < n_layers:
                x_lo = x_hi.astype(jnp.bfloat16)

        o_ref[...] = x_hi

    return kernel


def _make_skip_matrix(f_in, f_out, p_in, p_out, ws):
    """Padded bf16 matrix S with  x @ S == weigth_skip * logical_skip(x)."""
    if 2 * f_out == f_in:             # half: 0.5 * (x[2j] + x[2j+1])
        cols = jnp.arange(f_out)
        S = jnp.zeros((f_in, f_out), jnp.float32)
        S = S.at[2 * cols, cols].set(0.5).at[2 * cols + 1, cols].set(0.5)
    elif f_out == 2 * f_in:           # double: concat([x, x], axis=1)
        rows = jnp.arange(f_in)
        S = jnp.zeros((f_in, f_out), jnp.float32)
        S = S.at[rows, rows].set(1.0).at[rows, f_in + rows].set(1.0)
    else:
        return None
    S = S * jnp.asarray(ws, jnp.float32).reshape(())         # fold weigth_skip
    S = jnp.pad(S, ((0, p_in - f_in), (0, p_out - f_out)))
    return S.astype(jnp.bfloat16)


# ---------------------------------------------------------------------------
# Host wrapper: pad to lane-dense shapes, build specs, single pallas_call.
# ---------------------------------------------------------------------------
def pyramid_network(x, params, res_net=False, batch_tile=1024):
    x = jnp.asarray(x, jnp.float32)
    B, f0 = x.shape
    sizes = [f0] + [int(w.shape[1]) for (w, _, _) in params]
    padded = [_pad_feature(s) for s in sizes]

    # ---- batch tiling: large tiles, minimal pad waste, and an even grid of
    # >=2 steps when the batch allows it (keeps both v7x TensorCores busy).
    n_tiles = max(1, _cdiv(B, batch_tile))
    if B >= 2 * _SUBLANE_BF16:
        n_tiles = max(n_tiles, 2)
        if n_tiles % 2:
            n_tiles += 1
    TB = _round_up(_cdiv(B, n_tiles), _SUBLANE_BF16)
    B_pad = _round_up(B, TB)
    grid = B_pad // TB

    x_p = jnp.pad(x.astype(jnp.bfloat16),
                  ((0, B_pad - B), (0, padded[0] - f0)))

    op_inputs = [x_p]
    resident_shapes = []          # block shapes of grid-invariant inputs
    resident_bytes = 0
    layer_meta = []
    ws_vals = []

    for li, (w, b, ws) in enumerate(params):
        w = jnp.asarray(w, jnp.float32)
        b = jnp.asarray(b, jnp.float32)
        f_in, f_out = int(w.shape[0]), int(w.shape[1])
        p_in, p_out = padded[li], padded[li + 1]

        w_p = jnp.pad(w.astype(jnp.bfloat16),
                      ((0, p_in - f_in), (0, p_out - f_out)))
        b_p = jnp.pad(b.reshape(1, f_out), ((0, 0), (0, p_out - f_out)))
        op_inputs += [w_p, b_p]
        resident_shapes += [(p_in, p_out), (1, p_out)]
        resident_bytes += p_in * p_out * 2 + 8 * p_out * 4

        if not res_net:
            layer_meta.append("none")
            continue

        ws_vals.append(jnp.asarray(ws, jnp.float32).reshape(()))
        if f_out == f_in:
            layer_meta.append("same")
        else:
            S = _make_skip_matrix(f_in, f_out, p_in, p_out, ws)
            if S is None:
                # "the dimensions don't match for resNet module" -> plain dense
                layer_meta.append("none")
            else:
                layer_meta.append("half" if 2 * f_out == f_in else "double")
                op_inputs.append(S)
                resident_shapes.append((p_in, p_out))
                resident_bytes += p_in * p_out * 2

    has_ws = res_net and ("same" in layer_meta)
    if has_ws:
        op_inputs = [jnp.stack(ws_vals)] + op_inputs      # (L,) f32 in SMEM

    # ---- VMEM budget from the actual footprint (cap for v7x's 64 MiB / TC).
    act_in_bytes = 2 * TB * padded[0] * 2                 # bf16 x, 2 buffers
    act_out_bytes = 2 * TB * padded[-1] * 4               # f32 out, 2 buffers
    live_bytes = 4 * TB * max(padded) * 4                 # in-flight f32 temps
    vmem_limit = (act_in_bytes + act_out_bytes + live_bytes
                  + 2 * resident_bytes                    # worst case 2 buffers
                  + (4 << 20))                            # compiler headroom
    vmem_limit = int(min(max(vmem_limit, 16 << 20), 64 << 20))

    kernel = _make_fused_kernel(tuple(layer_meta), has_ws)

    def _in_specs(single_buffer_weights):
        kw = {"pipeline_mode": pl.Buffered(1)} if single_buffer_weights else {}
        specs = []
        if has_ws:
            specs.append(pl.BlockSpec(memory_space=pltpu.MemorySpace.SMEM))
        specs.append(pl.BlockSpec((TB, padded[0]), lambda i: (i, 0)))
        for shp in resident_shapes:                       # grid-invariant blocks
            specs.append(pl.BlockSpec(shp, lambda i: (0, 0), **kw))
        return specs

    def _call(single_buffer_weights):
        return pl.pallas_call(
            kernel,
            out_shape=jax.ShapeDtypeStruct((B_pad, padded[-1]), jnp.float32),
            grid=(grid,),
            in_specs=_in_specs(single_buffer_weights),
            out_specs=pl.BlockSpec((TB, padded[-1]), lambda i: (i, 0)),
            compiler_params=pltpu.CompilerParams(
                dimension_semantics=("parallel",),
                vmem_limit_bytes=vmem_limit,
            ),
        )(*op_inputs)

    try:
        out_p = _call(True)        # single-buffered resident weights
    except Exception:              # pipeline_mode unsupported -> default buffers
        out_p = _call(False)

    return out_p[:B, :sizes[-1]]


# ---------------------------------------------------------------------------
# Parameter init (mirrors nn.Linear layout, pre-transposed to [F_in, F_out]).
# ---------------------------------------------------------------------------
def init_pyramid_params(key, sizes, res_net=False):
    params = []
    for ii in range(len(sizes) - 1):
        key, kw, kb = jax.random.split(key, 3)
        f_in, f_out = sizes[ii], sizes[ii + 1]
        w = jax.random.normal(kw, (f_in, f_out), jnp.float32) * 0.1
        b = jax.random.normal(kb, (f_out,), jnp.float32) * 0.1
        ws = jnp.ones((1,), jnp.float32) if res_net else None
        params.append((w, b, ws))
    return params


# ---------------------------------------------------------------------------
# Pure-JAX reference (mirrors the PyTorch forward exactly, in f32)
# ---------------------------------------------------------------------------
def _ref_layer(x, w, b, ws, res_net):
    y = jnp.maximum(
        jnp.dot(x, w, precision=jax.lax.Precision.HIGHEST) + b, 0.0)
    if not res_net:
        return y
    f_in, f_out = w.shape
    if f_out == f_in:
        return ws[0] * x + y
    if 2 * f_out == f_in:
        return ws[0] * 0.5 * jnp.sum(x.reshape(x.shape[0], -1, 2), axis=2) + y
    if f_out == 2 * f_in:
        return ws[0] * jnp.concatenate([x, x], axis=1) + y
    return y


def _ref_network(x, params, res_net):
    for (w, b, ws) in params:
        x = _ref_layer(x, w, b, ws, res_net)
    return x


# ---------------------------------------------------------------------------
if __name__ == "__main__":
    key = jax.random.PRNGKey(0)
    k_x, k_p1, k_p2, k_p3 = jax.random.split(key, 4)

    # bf16 matmul operands -> relaxed tolerances vs the f32 reference.
    ATOL = RTOL = 5e-2

    # 1) plain pyramid (resNet=False): 32 -> 16 -> 8, batch 8
    sizes_plain = [32, 16, 8]
    B = 8
    x_plain = jax.random.normal(k_x, (B, sizes_plain[0]), jnp.float32)
    params_plain = init_pyramid_params(k_p1, sizes_plain, res_net=False)
    out_plain = jax.block_until_ready(
        pyramid_network(x_plain, params_plain, res_net=False))
    ref_plain = _ref_network(x_plain, params_plain, res_net=False)
    assert out_plain.shape == ref_plain.shape
    assert jnp.allclose(out_plain, ref_plain, atol=ATOL, rtol=RTOL)

    # 2) resNet pyramid exercising same / half / double skips: 32->32->16->32,
    #    batch 24 with batch_tile=8 to exercise a multi-step parallel grid.
    sizes_res = [32, 32, 16, 32]
    Br = 24
    x_res = jax.random.normal(k_x, (Br, sizes_res[0]), jnp.float32)
    params_res = init_pyramid_params(k_p2, sizes_res, res_net=True)
    out_res = jax.block_until_ready(
        pyramid_network(x_res, params_res, res_net=True, batch_tile=8))
    ref_res = _ref_network(x_res, params_res, res_net=True)
    assert out_res.shape == ref_res.shape
    assert jnp.allclose(out_res, ref_res, atol=ATOL, rtol=RTOL)

    # 3) resNet pyramid hitting the "dimensions don't match" fallback + half:
    #    32 -> 48 (fallback) -> 24 (half)
    sizes_mis = [32, 48, 24]
    x_mis = jax.random.normal(k_x, (B, sizes_mis[0]), jnp.float32)
    params_mis = init_pyramid_params(k_p3, sizes_mis, res_net=True)
    out_mis = jax.block_until_ready(
        pyramid_network(x_mis, params_mis, res_net=True))
    ref_mis = _ref_network(x_mis, params_mis, res_net=True)
    assert jnp.allclose(out_mis, ref_mis, atol=ATOL, rtol=RTOL)

    print("KERNEL_OK")
</pallas_src>

<mosaic_0001>
module attributes {stable_mosaic.version = 11 : i64} {
  func.func @kernel(%arg0: i32, %arg1: memref<16x128xbf16, #tpu.memory_space<vmem>>, %arg2: memref<128x128xbf16, #tpu.memory_space<vmem>>, %arg3: memref<1x128xf32, #tpu.memory_space<vmem>>, %arg4: memref<128x128xbf16, #tpu.memory_space<vmem>>, %arg5: memref<1x128xf32, #tpu.memory_space<vmem>>, %arg6: memref<16x128xf32, #tpu.memory_space<vmem>>) attributes {dimension_semantics = [#tpu.dimension_semantics<parallel>], iteration_bounds = array<i64: 1>, scalar_prefetch = 0 : i64, scratch_operands = 0 : i64, tpu.core_type = #tpu.core_type<tc>, window_params = [{transform_indices = @transform_0, window_bounds = array<i64: 16, 128>}, {pipeline_mode = #tpu.pipeline_mode<synchronous>, transform_indices = @transform_1, window_bounds = array<i64: 128, 128>}, {pipeline_mode = #tpu.pipeline_mode<synchronous>, transform_indices = @transform_2, window_bounds = array<i64: 1, 128>}, {pipeline_mode = #tpu.pipeline_mode<synchronous>, transform_indices = @transform_3, window_bounds = array<i64: 128, 128>}, {pipeline_mode = #tpu.pipeline_mode<synchronous>, transform_indices = @transform_4, window_bounds = array<i64: 1, 128>}, {transform_indices = @transform_5, window_bounds = array<i64: 16, 128>}]} {
    %c0 = arith.constant 0 : index
    %c0_0 = arith.constant 0 : index
    %0 = vector.load %arg1[%c0, %c0_0] : memref<16x128xbf16, #tpu.memory_space<vmem>>, vector<16x128xbf16>
    %c0_1 = arith.constant 0 : index
    %c0_2 = arith.constant 0 : index
    %1 = vector.load %arg2[%c0_1, %c0_2] : memref<128x128xbf16, #tpu.memory_space<vmem>>, vector<128x128xbf16>
    %cst = arith.constant dense<0.000000e+00> : vector<16x128xf32>
    %2 = tpu.matmul %0, %1, %cst {dimension_numbers = #tpu.dot_dimension_numbers<[1], [0], [0], [1], [0, 0, 1, 1], [], []>} : vector<16x128xbf16>, vector<128x128xbf16>, vector<16x128xf32> -> vector<16x128xf32>
    %c0_3 = arith.constant 0 : index
    %c0_4 = arith.constant 0 : index
    %3 = vector.load %arg3[%c0_3, %c0_4] : memref<1x128xf32, #tpu.memory_space<vmem>>, vector<1x128xf32>
    %4 = vector.broadcast %3 : vector<1x128xf32> to vector<16x128xf32>
    %5 = arith.addf %2, %4 : vector<16x128xf32>
    %cst_5 = arith.constant 0.000000e+00 : f32
    %6 = vector.broadcast %cst_5 : f32 to vector<16x128xf32>
    %7 = arith.maximumf %5, %6 : vector<16x128xf32>
    %8 = arith.truncf %7 : vector<16x128xf32> to vector<16x128xbf16>
    %c0_6 = arith.constant 0 : index
    %c0_7 = arith.constant 0 : index
    %9 = vector.load %arg4[%c0_6, %c0_7] : memref<128x128xbf16, #tpu.memory_space<vmem>>, vector<128x128xbf16>
    %cst_8 = arith.constant dense<0.000000e+00> : vector<16x128xf32>
    %10 = tpu.matmul %8, %9, %cst_8 {dimension_numbers = #tpu.dot_dimension_numbers<[1], [0], [0], [1], [0, 0, 1, 1], [], []>} : vector<16x128xbf16>, vector<128x128xbf16>, vector<16x128xf32> -> vector<16x128xf32>
    %c0_9 = arith.constant 0 : index
    %c0_10 = arith.constant 0 : index
    %11 = vector.load %arg5[%c0_9, %c0_10] : memref<1x128xf32, #tpu.memory_space<vmem>>, vector<1x128xf32>
    %12 = vector.broadcast %11 : vector<1x128xf32> to vector<16x128xf32>
    %13 = arith.addf %10, %12 : vector<16x128xf32>
    %cst_11 = arith.constant 0.000000e+00 : f32
    %14 = vector.broadcast %cst_11 : f32 to vector<16x128xf32>
    %15 = arith.maximumf %13, %14 : vector<16x128xf32>
    %c0_12 = arith.constant 0 : index
    %c0_13 = arith.constant 0 : index
    %16 = vector.load %arg6[%c0_12, %c0_13] : memref<16x128xf32, #tpu.memory_space<vmem>>, vector<16x128xf32>
    tpu.vector_store %arg6[%c0_12, %c0_13], %15 {strides = array<i32>} : memref<16x128xf32, #tpu.memory_space<vmem>>, vector<16x128xf32>,
    return
  }
  func.func @transform_0(%arg0: i32) -> (i32, i32) {
    %c0_i32 = arith.constant 0 : i32
    %c0_i32_0 = arith.constant 0 : i32
    return %arg0, %c0_i32 : i32, i32
  }
  func.func @transform_1(%arg0: i32) -> (i32, i32) {
    %c0_i32 = arith.constant 0 : i32
    %c0_i32_0 = arith.constant 0 : i32
    %c0_i32_1 = arith.constant 0 : i32
    return %c0_i32, %c0_i32_0 : i32, i32
  }
  func.func @transform_2(%arg0: i32) -> (i32, i32) {
    %c0_i32 = arith.constant 0 : i32
    %c0_i32_0 = arith.constant 0 : i32
    %c0_i32_1 = arith.constant 0 : i32
    return %c0_i32, %c0_i32_0 : i32, i32
  }
  func.func @transform_3(%arg0: i32) -> (i32, i32) {
    %c0_i32 = arith.constant 0 : i32
    %c0_i32_0 = arith.constant 0 : i32
    %c0_i32_1 = arith.constant 0 : i32
    return %c0_i32, %c0_i32_0 : i32, i32
  }
  func.func @transform_4(%arg0: i32) -> (i32, i32) {
    %c0_i32 = arith.constant 0 : i32
    %c0_i32_0 = arith.constant 0 : i32
    %c0_i32_1 = arith.constant 0 : i32
    return %c0_i32, %c0_i32_0 : i32, i32
  }
  func.func @transform_5(%arg0: i32) -> (i32, i32) {
    %c0_i32 = arith.constant 0 : i32
    %c0_i32_0 = arith.constant 0 : i32
    return %arg0, %c0_i32 : i32, i32
  }
}

module attributes {stable_mosaic.version = 11 : i64} {
  func.func @kernel(%arg0: i32, %arg1: memref<16x128xbf16, #tpu.memory_space<vmem>>, %arg2: memref<128x128xbf16, #tpu.memory_space<vmem>>, %arg3: memref<1x128xf32, #tpu.memory_space<vmem>>, %arg4: memref<128x128xbf16, #tpu.memory_space<vmem>>, %arg5: memref<1x128xf32, #tpu.memory_space<vmem>>, %arg6: memref<16x128xf32, #tpu.memory_space<vmem>>) attributes {dimension_semantics = [#tpu.dimension_semantics<parallel>], iteration_bounds = array<i64: 1>, scalar_prefetch = 0 : i64, scratch_operands = 0 : i64, tpu.core_type = #tpu.core_type<tc>, window_params = [{transform_indices = @transform_0, window_bounds = array<i64: 16, 128>}, {pipeline_mode = #tpu.pipeline_mode<synchronous>, transform_indices = @transform_1, window_bounds = array<i64: 128, 128>}, {pipeline_mode = #tpu.pipeline_mode<synchronous>, transform_indices = @transform_2, window_bounds = array<i64: 1, 128>}, {pipeline_mode = #tpu.pipeline_mode<synchronous>, transform_indices = @transform_3, window_bounds = array<i64: 128, 128>}, {pipeline_mode = #tpu.pipeline_mode<synchronous>, transform_indices = @transform_4, window_bounds = array<i64: 1, 128>}, {transform_indices = @transform_5, window_bounds = array<i64: 16, 128>}]} {
    %c0 = arith.constant 0 : index
    %c0_0 = arith.constant 0 : index
    %0 = vector.load %arg1[%c0, %c0_0] : memref<16x128xbf16, #tpu.memory_space<vmem>>, vector<16x128xbf16>
    %c0_1 = arith.constant 0 : index
    %c0_2 = arith.constant 0 : index
    %1 = vector.load %arg2[%c0_1, %c0_2] : memref<128x128xbf16, #tpu.memory_space<vmem>>, vector<128x128xbf16>
    %cst = arith.constant dense<0.000000e+00> : vector<16x128xf32>
    %2 = tpu.matmul %0, %1, %cst {dimension_numbers = #tpu.dot_dimension_numbers<[1], [0], [0], [1], [0, 0, 1, 1], [], []>} : vector<16x128xbf16>, vector<128x128xbf16>, vector<16x128xf32> -> vector<16x128xf32>
    %c0_3 = arith.constant 0 : index
    %c0_4 = arith.constant 0 : index
    %3 = vector.load %arg3[%c0_3, %c0_4] : memref<1x128xf32, #tpu.memory_space<vmem>>, vector<1x128xf32>
    %4 = vector.broadcast %3 : vector<1x128xf32> to vector<16x128xf32>
    %5 = arith.addf %2, %4 : vector<16x128xf32>
    %cst_5 = arith.constant 0.000000e+00 : f32
    %6 = vector.broadcast %cst_5 : f32 to vector<16x128xf32>
    %7 = arith.maximumf %5, %6 : vector<16x128xf32>
    %8 = arith.truncf %7 : vector<16x128xf32> to vector<16x128xbf16>
    %c0_6 = arith.constant 0 : index
    %c0_7 = arith.constant 0 : index
    %9 = vector.load %arg4[%c0_6, %c0_7] : memref<128x128xbf16, #tpu.memory_space<vmem>>, vector<128x128xbf16>
    %cst_8 = arith.constant dense<0.000000e+00> : vector<16x128xf32>
    %10 = tpu.matmul %8, %9, %cst_8 {dimension_numbers = #tpu.dot_dimension_numbers<[1], [0], [0], [1], [0, 0, 1, 1], [], []>} : vector<16x128xbf16>, vector<128x128xbf16>, vector<16x128xf32> -> vector<16x128xf32>
    %c0_9 = arith.constant 0 : index
    %c0_10 = arith.constant 0 : index
    %11 = vector.load %arg5[%c0_9, %c0_10] : memref<1x128xf32, #tpu.memory_space<vmem>>, vector<1x128xf32>
    %12 = vector.broadcast %11 : vector<1x128xf32> to vector<16x128xf32>
    %13 = arith.addf %10, %12 : vector<16x128xf32>
    %cst_11 = arith.constant 0.000000e+00 : f32
    %14 = vector.broadcast %cst_11 : f32 to vector<16x128xf32>
    %15 = arith.maximumf %13, %14 : vector<16x128xf32>
    %c0_12 = arith.constant 0 : index
    %c0_13 = arith.constant 0 : index
    %16 = vector.load %arg6[%c0_12, %c0_13] : memref<16x128xf32, #tpu.memory_space<vmem>>, vector<16x128xf32>
    tpu.vector_store %arg6[%c0_12, %c0_13], %15 {strides = array<i32>} : memref<16x128xf32, #tpu.memory_space<vmem>>, vector<16x128xf32>,
    return
  }
  func.func @transform_0(%arg0: i32) -> (i32, i32) {
    %c0_i32 = arith.constant 0 : i32
    %c0_i32_0 = arith.constant 0 : i32
    return %arg0, %c0_i32 : i32, i32
  }
  func.func @transform_1(%arg0: i32) -> (i32, i32) {
    %c0_i32 = arith.constant 0 : i32
    %c0_i32_0 = arith.constant 0 : i32
    %c0_i32_1 = arith.constant 0 : i32
    return %c0_i32, %c0_i32_0 : i32, i32
  }
  func.func @transform_2(%arg0: i32) -> (i32, i32) {
    %c0_i32 = arith.constant 0 : i32
    %c0_i32_0 = arith.constant 0 : i32
    %c0_i32_1 = arith.constant 0 : i32
    return %c0_i32, %c0_i32_0 : i32, i32
  }
  func.func @transform_3(%arg0: i32) -> (i32, i32) {
    %c0_i32 = arith.constant 0 : i32
    %c0_i32_0 = arith.constant 0 : i32
    %c0_i32_1 = arith.constant 0 : i32
    return %c0_i32, %c0_i32_0 : i32, i32
  }
  func.func @transform_4(%arg0: i32) -> (i32, i32) {
    %c0_i32 = arith.constant 0 : i32
    %c0_i32_0 = arith.constant 0 : i32
    %c0_i32_1 = arith.constant 0 : i32
    return %c0_i32, %c0_i32_0 : i32, i32
  }
  func.func @transform_5(%arg0: i32) -> (i32, i32) {
    %c0_i32 = arith.constant 0 : i32
    %c0_i32_0 = arith.constant 0 : i32
    return %arg0, %c0_i32 : i32, i32
  }
}

</mosaic_0001>

<bundles_post_ra>
// kernel: tpu_custom_call.1
= control target key start
LH: loop header
LB: loop body
LE: loop exit
PB: predicated region body
PF: predicated region fallthrough
CT: control target
= control target key end

     0   :  { %10 = vsyncpa [#allocation3], 0  ;;  %s628_s0 = inlined_call_operand.hbm [shape: bf16[16,128], index: 0, kind: input, shape index: {}]   ;;  %s629_s1 = inlined_call_operand.hbm [shape: bf16[128,128], index: 1, kind: input, shape index: {}]   ;;  %s630_s2 = inlined_call_operand.vmem [shape: f32[1,128], index: 2, kind: input, shape index: {}]   ;;  %s631_s3 = inlined_call_operand.hbm [shape: bf16[128,128], index: 3, kind: input, shape index: {}]   ;;  %s632_s4 = inlined_call_operand.vmem [shape: f32[1,128], index: 4, kind: input, shape index: {}]   ;;  %s633_s5 = inlined_call_operand.hbm [shape: f32[16,128], index: 5, kind: output, shape index: {}]  }
   0x1   :  { %11 = vsyncpa [#allocation6], 0 }
   0x2   :  { %12 = vsyncpa [#allocation4], 0  ;;  %s518_s18 = smov [#allocation5]   ;;  %s519_s20 = smov [#allocation2]  }
   0x3   :  { %s30_s19 = sshll.u32 %s518_s18, 4  ;;  %s18_s21 = sshll.u32 %s519_s20, 4  ;;  %s31_s19 = int_to_ptr.vmem [resolvable:$true] %s30_s19  ;;  %s558_s21 = int_to_ptr.vmem [resolvable:$true] %s18_s21 }
   0x4   :  { %s424_s24 = scalar_lea.hbm %s629_s1, 1024 }
   0x5   :  { %p425_p0 = scmp.ne.s32.totalorder %s629_s1, %s424_s24  ;;  %p428_p1 = scmp.lt.u32.totalorder %s424_s24, %s629_s1 }
   0x7   :  { %p430_p2 = pnand %p428_p1, %p425_p0 }
   0x9   :  { %433 = shalt.err (!%p430_p2)
}
   0xa   :  { %s434_s29 = scalar_lea.vmem %s31_s19, 1024  ;;  %p439_p4 = scmp.lt.s32.totalorder %s31_s19, %s31_s19 }
   0xb   :  { %p435_p3 = scmp.ne.s32.totalorder %s31_s19, %s434_s29  ;;  %p440_p5 = scmp.lt.s32.totalorder %s434_s29, %s434_s29 }
   0xd   :  { %p441_p6 = por %p440_p5, %p439_p4 }
   0xf   :  { %p442_p7 = pnand %p441_p6, %p435_p3 }
  0x11   :  { %445 = shalt.err (!%p442_p7)
}
  0x12   :  { %s520_s30 = smov 64   ;;  %s521_s6 = smov 4  }
  0x13   :  { %36 = dma.hbm_to_vmem [thread:$0]  %s629_s1, 1024, %s31_s19, [#allocation6], %s520_s30, %s520_s30, %s521_s6  }
  0x14   :  { %s446_s11 = scalar_lea.hbm %s628_s0, 128 }
  0x15   :  { %p447_p8 = scmp.ne.s32.totalorder %s628_s0, %s446_s11  ;;  %p450_p9 = scmp.lt.u32.totalorder %s446_s11, %s628_s0 }
  0x17   :  { %p452_p10 = pnand %p450_p9, %p447_p8 }
  0x19   :  { %455 = shalt.err (!%p452_p10)
}
  0x1a   :  { %s456_s16 = scalar_lea.vmem %s558_s21, 128  ;;  %p461_p12 = scmp.lt.s32.totalorder %s558_s21, %s558_s21 }
  0x1b   :  { %p457_p11 = scmp.ne.s32.totalorder %s558_s21, %s456_s16  ;;  %p462_p13 = scmp.lt.s32.totalorder %s456_s16, %s456_s16 }
  0x1d   :  { %p463_p0 = por %p462_p13, %p461_p12 }
  0x1f   :  { %p464_p1 = pnand %p463_p0, %p457_p11 }
  0x21   :  { %467 = shalt.err (!%p464_p1)
}
  0x22   :  { %24 = dma.hbm_to_vmem [thread:$0]  %s628_s0, 128, %s558_s21, [#allocation3], %s520_s30, %s520_s30, %s521_s6  }
  0x23   :  { %s522_s18 = smov [#allocation7]   ;;  %s468_s23 = scalar_lea.hbm %s631_s3, 1024 }
  0x24   :  { %s44_s19 = sshll.u32 %s522_s18, 4  ;;  %p469_p2 = scmp.ne.s32.totalorder %s631_s3, %s468_s23  ;;  %s45_s19 = int_to_ptr.vmem [resolvable:$true] %s44_s19 }
  0x25   :  { %p472_p3 = scmp.lt.u32.totalorder %s468_s23, %s631_s3 }
  0x27   :  { %p474_p4 = pnand %p472_p3, %p469_p2 }
  0x29   :  { %477 = shalt.err (!%p474_p4)
}
  0x2a   :  { %s478_s28 = scalar_lea.vmem %s45_s19, 1024  ;;  %p483_p6 = scmp.lt.s32.totalorder %s45_s19, %s45_s19 }
  0x2b   :  { %p479_p5 = scmp.ne.s32.totalorder %s45_s19, %s478_s28  ;;  %p484_p7 = scmp.lt.s32.totalorder %s478_s28, %s478_s28 }
  0x2d   :  { %p485_p8 = por %p484_p7, %p483_p6 }
  0x2f   :  { %p486_p9 = pnand %p485_p8, %p479_p5 }
  0x31   :  { %489 = shalt.err (!%p486_p9)
}
  0x32   :  { %50 = dma.hbm_to_vmem [thread:$0]  %s631_s3, 1024, %s45_s19, [#allocation6], %s520_s30, %s520_s30, %s521_s6  }
  0x33   :  { %512 = dma.done.wait [#allocation3], 128  }
  0x34   :  { %513 = vsyncadd [#allocation3], 4294967168 }
  0x35   :  { %514 = dma.done.wait [#allocation6], 2048  }
  0x36   :  { %515 = vsyncadd [#allocation6], 4294965248  ;;  %v523_v0 = vmov 0.0   ;;  %vm524_vm0 = vmmov 0   ;;  %v407_v1 = vld [vmem:[#allocation5] sm:$0xff]   ;;  %v408_v2 = vld [vmem:[#allocation5 + $0x8] sm:$0xff]  }
  0x37   :  { %357 = vmatprep.subr.bf16.mxu0 %v523_v0  ;;  %373 = vmatprep.mubr.msk.bf16.mxu0 %vm524_vm0, %v523_v0  ;;  %v409_v3 = vld [vmem:[#allocation5 + $0x10] sm:$0xff]   ;;  %v416_v4 = vld [vmem:[#allocation7] sm:$0xff]   ;;  %v410_v5 = vld [vmem:[#allocation5 + $0x18] sm:$0xff]   ;;  %s525_s7 = smov [#allocation8]  }
  0x38   :  { %377 = vmatprep.subr.bf16.mxu1 %v523_v0  ;;  %393 = vmatprep.mubr.msk.bf16.mxu1 %vm524_vm0, %v523_v0  ;;  %v417_v6 = vld [vmem:[#allocation7 + $0x8] sm:$0xff]   ;;  %v411_v7 = vld [vmem:[#allocation5 + $0x20] sm:$0xff]   ;;  %v418_v8 = vld [vmem:[#allocation7 + $0x10] sm:$0xff]   ;;  %s307_s8 = sshll.u32 %s525_s7, 4  ;;  %s308_s8 = int_to_ptr.vmem [resolvable:$true] %s307_s8 }
  0x39   :  { %358 = vmatpush3.bf16.msra.mxu0 %v407_v1  ;;  %378 = vmatpush3.bf16.msra.mxu1 %v416_v4  ;;  %v412_v9 = vld [vmem:[#allocation5 + $0x28] sm:$0xff]   ;;  %v419_v10 = vld [vmem:[#allocation7 + $0x18] sm:$0xff]   ;;  %v413_v11 = vld [vmem:[#allocation5 + $0x30] sm:$0xff]   ;;  %p495_p11 = scmp.lt.s32.totalorder %s308_s8, %s308_s8 }
  0x3a   :  { %359 = vmatprep.subr.bf16.mxu0 %v523_v0  ;;  %379 = vmatprep.subr.bf16.mxu1 %v523_v0  ;;  %v420_v12 = vld [vmem:[#allocation7 + $0x20] sm:$0xff]   ;;  %v414_v13 = vld [vmem:[#allocation5 + $0x38] sm:$0xff]   ;;  %v421_v14 = vld [vmem:[#allocation7 + $0x28] sm:$0xff]  }
  0x3b   :  { %v415_v15 = vld [vmem:[#allocation2] sm:$0xff]   ;;  %v422_v16 = vld [vmem:[#allocation7 + $0x30] sm:$0xff]  }
  0x3c   :  { %v423_v17 = vld [vmem:[#allocation7 + $0x38] sm:$0xff]  }
  0x3d   :  { %360 = vmatpush3.bf16.msra.mxu0 %v408_v2  ;;  %380 = vmatpush3.bf16.msra.mxu1 %v417_v6  ;;  %v320_v18 = vld [vmem:[%s630_s2] ss:$0 sm:$0xff]  ;;  %s490_s2 = scalar_lea.vmem %s308_s8, 256 }
  0x3e   :  { %361 = vmatprep.subr.bf16.mxu0 %v523_v0  ;;  %381 = vmatprep.subr.bf16.mxu1 %v523_v0  ;;  %v330_v28 = vld [vmem:[%s632_s4] ss:$0 sm:$0xff]  ;;  %p491_p10 = scmp.ne.s32.totalorder %s308_s8, %s490_s2  ;;  %p496_p12 = scmp.lt.s32.totalorder %s490_s2, %s490_s2 }
  0x40   :  { %p497_p13 = por %p496_p12, %p495_p11 }
  0x41   :  { %362 = vmatpush3.bf16.msra.mxu0 %v409_v3  ;;  %382 = vmatpush3.bf16.msra.mxu1 %v418_v8 }
  0x42   :  { %363 = vmatprep.subr.bf16.mxu0 %v523_v0  ;;  %383 = vmatprep.subr.bf16.mxu1 %v523_v0  ;;  %p498_p0 = pnand %p497_p13, %p491_p10 }
  0x45   :  { %364 = vmatpush3.bf16.msra.mxu0 %v410_v5  ;;  %384 = vmatpush3.bf16.msra.mxu1 %v419_v10 }
  0x46   :  { %365 = vmatprep.subr.bf16.mxu0 %v523_v0  ;;  %385 = vmatprep.subr.bf16.mxu1 %v523_v0 }
  0x49   :  { %366 = vmatpush3.bf16.msra.mxu0 %v411_v7  ;;  %386 = vmatpush3.bf16.msra.mxu1 %v420_v12 }
  0x4a   :  { %367 = vmatprep.subr.bf16.mxu0 %v523_v0  ;;  %387 = vmatprep.subr.bf16.mxu1 %v523_v0 }
  0x4d   :  { %368 = vmatpush3.bf16.msra.mxu0 %v412_v9  ;;  %388 = vmatpush3.bf16.msra.mxu1 %v421_v14 }
  0x4e   :  { %369 = vmatprep.subr.bf16.mxu0 %v523_v0  ;;  %389 = vmatprep.subr.bf16.mxu1 %v523_v0 }
  0x51   :  { %370 = vmatpush3.bf16.msra.mxu0 %v413_v11  ;;  %390 = vmatpush3.bf16.msra.mxu1 %v422_v16 }
  0x52   :  { %371 = vmatprep.subr.bf16.mxu0 %v523_v0  ;;  %391 = vmatprep.subr.bf16.mxu1 %v523_v0 }
  0x55   :  { %372 = vmatpush3.bf16.msra.mxu0 %v414_v13  ;;  %392 = vmatpush3.bf16.msra.mxu1 %v423_v17 }
  0x58   :  { %374 = vmatmul.mubr.bf16.vlgmr.msra.gmra.mrb[0].mxu0 %v415_v15 }
 0x12b   :  { %v176_v19 = vpop.f32.mrb[0].mxu0 }
 0x12c   :  { %v177_v20 = vadd.f32 %v320_v18, %v176_v19  ;;  %v375_v21 = vpop.f32.mrb[1].mxu0 }
 0x12d   :  { %v179_v22 = vpop.f32.mrb[2].mxu0 }
 0x12e   :  { %v180_v23 = vadd.f32 %v320_v18, %v179_v22  ;;  %v376_v24 = vpop.f32.mrb[3].mxu0  ;;  %v183_v25 = vmax.f32 %v177_v20, 0.0 }
 0x130   :  { %v184_v26 = vmax.f32 %v180_v23, 0.0 }
 0x132   :  { %v185_v27 = vpack.c.bf16 %v184_v26, %v183_v25 }
 0x134   :  { %394 = vmatmul.mubr.bf16.vlgmr.msra.gmra.mrb[0].mxu1 %v185_v27 }
 0x207   :  { %v291_v29 = vpop.f32.mrb[0].mxu1 }
 0x208   :  { %v292_v30 = vadd.f32 %v330_v28, %v291_v29  ;;  %v395_v31 = vpop.f32.mrb[1].mxu1 }
 0x209   :  { %v294_v32 = vpop.f32.mrb[2].mxu1 }
 0x20a   :  { %v298_v33 = vmax.f32 %v292_v30, 0.0  ;;  %v295_v34 = vadd.f32 %v330_v28, %v294_v32  ;;  %v396_v35 = vpop.f32.mrb[3].mxu1 }
 0x20c   :  { %300 = vst [vmem:[#allocation8] sm:$0xff] %v298_v33  ;;  %v299_v36 = vmax.f32 %v295_v34, 0.0 }
 0x20e   :  { %301 = vst [vmem:[#allocation8 + $0x8] sm:$0xff] %v299_v36 }
 0x20f   :  { %501 = shalt.err (!%p498_p0)
}
 0x210   :  { %s502_s10 = scalar_lea.hbm %s633_s5, 256 }
 0x211   :  { %p503_p1 = scmp.ne.s32.totalorder %s633_s5, %s502_s10  ;;  %p506_p2 = scmp.lt.u32.totalorder %s502_s10, %s633_s5 }
 0x213   :  { %p508_p3 = pnand %p506_p2, %p503_p1 }
 0x215   :  { %511 = shalt.err (!%p508_p3)
}
 0x216   :  { %s526_s15 = smov 128   ;;  %s527_s16 = smov 8  }
 0x217   :  { %313 = dma.vmem_to_hbm [thread:$0]  %s308_s8, 256, %s633_s5, [#allocation4], %s526_s15, %s526_s15, %s527_s16  }
 0x218   :  { %516 = dma.done.wait [#allocation4], 256  }
 0x219   :  { %517 = vsyncadd [#allocation4], 4294967040 }
 0x21a   :  { %317 = vsyncpa [#allocation3], 1 }
 0x21b   :  { %318 = vsyncpa [#allocation6], 1 }
 0x21c   :  { %319 = vsyncpa [#allocation4], 1 }

// kernel: tpu_custom_call.1
= control target key start
LH: loop header
LB: loop body
LE: loop exit
PB: predicated region body
PF: predicated region fallthrough
CT: control target
= control target key end

     0   :  { %10 = vsyncpa [#allocation3], 0  ;;  %s628_s0 = inlined_call_operand.hbm [shape: bf16[16,128], index: 0, kind: input, shape index: {}]   ;;  %s629_s1 = inlined_call_operand.hbm [shape: bf16[128,128], index: 1, kind: input, shape index: {}]   ;;  %s630_s2 = inlined_call_operand.vmem [shape: f32[1,128], index: 2, kind: input, shape index: {}]   ;;  %s631_s3 = inlined_call_operand.hbm [shape: bf16[128,128], index: 3, kind: input, shape index: {}]   ;;  %s632_s4 = inlined_call_operand.vmem [shape: f32[1,128], index: 4, kind: input, shape index: {}]   ;;  %s633_s5 = inlined_call_operand.hbm [shape: f32[16,128], index: 5, kind: output, shape index: {}]  }
   0x1   :  { %11 = vsyncpa [#allocation6], 0 }
   0x2   :  { %12 = vsyncpa [#allocation4], 0  ;;  %s518_s18 = smov [#allocation5]   ;;  %s519_s20 = smov [#allocation2]  }
   0x3   :  { %s30_s19 = sshll.u32 %s518_s18, 4  ;;  %s18_s21 = sshll.u32 %s519_s20, 4  ;;  %s31_s19 = int_to_ptr.vmem [resolvable:$true] %s30_s19  ;;  %s558_s21 = int_to_ptr.vmem [resolvable:$true] %s18_s21 }
   0x4   :  { %s424_s24 = scalar_lea.hbm %s629_s1, 1024 }
   0x5   :  { %p425_p0 = scmp.ne.s32.totalorder %s629_s1, %s424_s24  ;;  %p428_p1 = scmp.lt.u32.totalorder %s424_s24, %s629_s1 }
   0x7   :  { %p430_p2 = pnand %p428_p1, %p425_p0 }
   0x9   :  { %433 = shalt.err (!%p430_p2)
}
   0xa   :  { %s434_s29 = scalar_lea.vmem %s31_s19, 1024  ;;  %p439_p4 = scmp.lt.s32.totalorder %s31_s19, %s31_s19 }
   0xb   :  { %p435_p3 = scmp.ne.s32.totalorder %s31_s19, %s434_s29  ;;  %p440_p5 = scmp.lt.s32.totalorder %s434_s29, %s434_s29 }
   0xd   :  { %p441_p6 = por %p440_p5, %p439_p4 }
   0xf   :  { %p442_p7 = pnand %p441_p6, %p435_p3 }
  0x11   :  { %445 = shalt.err (!%p442_p7)
}
  0x12   :  { %s520_s30 = smov 64   ;;  %s521_s6 = smov 4  }
  0x13   :  { %36 = dma.hbm_to_vmem [thread:$0]  %s629_s1, 1024, %s31_s19, [#allocation6], %s520_s30, %s520_s30, %s521_s6  }
  0x14   :  { %s446_s11 = scalar_lea.hbm %s628_s0, 128 }
  0x15   :  { %p447_p8 = scmp.ne.s32.totalorder %s628_s0, %s446_s11  ;;  %p450_p9 = scmp.lt.u32.totalorder %s446_s11, %s628_s0 }
  0x17   :  { %p452_p10 = pnand %p450_p9, %p447_p8 }
  0x19   :  { %455 = shalt.err (!%p452_p10)
}
  0x1a   :  { %s456_s16 = scalar_lea.vmem %s558_s21, 128  ;;  %p461_p12 = scmp.lt.s32.totalorder %s558_s21, %s558_s21 }
  0x1b   :  { %p457_p11 = scmp.ne.s32.totalorder %s558_s21, %s456_s16  ;;  %p462_p13 = scmp.lt.s32.totalorder %s456_s16, %s456_s16 }
  0x1d   :  { %p463_p0 = por %p462_p13, %p461_p12 }
  0x1f   :  { %p464_p1 = pnand %p463_p0, %p457_p11 }
  0x21   :  { %467 = shalt.err (!%p464_p1)
}
  0x22   :  { %24 = dma.hbm_to_vmem [thread:$0]  %s628_s0, 128, %s558_s21, [#allocation3], %s520_s30, %s520_s30, %s521_s6  }
  0x23   :  { %s522_s18 = smov [#allocation7]   ;;  %s468_s23 = scalar_lea.hbm %s631_s3, 1024 }
  0x24   :  { %s44_s19 = sshll.u32 %s522_s18, 4  ;;  %p469_p2 = scmp.ne.s32.totalorder %s631_s3, %s468_s23  ;;  %s45_s19 = int_to_ptr.vmem [resolvable:$true] %s44_s19 }
  0x25   :  { %p472_p3 = scmp.lt.u32.totalorder %s468_s23, %s631_s3 }
  0x27   :  { %p474_p4 = pnand %p472_p3, %p469_p2 }
  0x29   :  { %477 = shalt.err (!%p474_p4)
}
  0x2a   :  { %s478_s28 = scalar_lea.vmem %s45_s19, 1024  ;;  %p483_p6 = scmp.lt.s32.totalorder %s45_s19, %s45_s19 }
  0x2b   :  { %p479_p5 = scmp.ne.s32.totalorder %s45_s19, %s478_s28  ;;  %p484_p7 = scmp.lt.s32.totalorder %s478_s28, %s478_s28 }
  0x2d   :  { %p485_p8 = por %p484_p7, %p483_p6 }
  0x2f   :  { %p486_p9 = pnand %p485_p8, %p479_p5 }
  0x31   :  { %489 = shalt.err (!%p486_p9)
}
  0x32   :  { %50 = dma.hbm_to_vmem [thread:$0]  %s631_s3, 1024, %s45_s19, [#allocation6], %s520_s30, %s520_s30, %s521_s6  }
  0x33   :  { %512 = dma.done.wait [#allocation3], 128  }
  0x34   :  { %513 = vsyncadd [#allocation3], 4294967168 }
  0x35   :  { %514 = dma.done.wait [#allocation6], 2048  }
  0x36   :  { %515 = vsyncadd [#allocation6], 4294965248  ;;  %v523_v0 = vmov 0.0   ;;  %vm524_vm0 = vmmov 0   ;;  %v407_v1 = vld [vmem:[#allocation5] sm:$0xff]   ;;  %v408_v2 = vld [vmem:[#allocation5 + $0x8] sm:$0xff]  }
  0x37   :  { %357 = vmatprep.subr.bf16.mxu0 %v523_v0  ;;  %373 = vmatprep.mubr.msk.bf16.mxu0 %vm524_vm0, %v523_v0  ;;  %v409_v3 = vld [vmem:[#allocation5 + $0x10] sm:$0xff]   ;;  %v416_v4 = vld [vmem:[#allocation7] sm:$0xff]   ;;  %v410_v5 = vld [vmem:[#allocation5 + $0x18] sm:$0xff]   ;;  %s525_s7 = smov [#allocation8]  }
  0x38   :  { %377 = vmatprep.subr.bf16.mxu1 %v523_v0  ;;  %393 = vmatprep.mubr.msk.bf16.mxu1 %vm524_vm0, %v523_v0  ;;  %v417_v6 = vld [vmem:[#allocation7 + $0x8] sm:$0xff]   ;;  %v411_v7 = vld [vmem:[#allocation5 + $0x20] sm:$0xff]   ;;  %v418_v8 = vld [vmem:[#allocation7 + $0x10] sm:$0xff]   ;;  %s307_s8 = sshll.u32 %s525_s7, 4  ;;  %s308_s8 = int_to_ptr.vmem [resolvable:$true] %s307_s8 }
  0x39   :  { %358 = vmatpush3.bf16.msra.mxu0 %v407_v1  ;;  %378 = vmatpush3.bf16.msra.mxu1 %v416_v4  ;;  %v412_v9 = vld [vmem:[#allocation5 + $0x28] sm:$0xff]   ;;  %v419_v10 = vld [vmem:[#allocation7 + $0x18] sm:$0xff]   ;;  %v413_v11 = vld [vmem:[#allocation5 + $0x30] sm:$0xff]   ;;  %p495_p11 = scmp.lt.s32.totalorder %s308_s8, %s308_s8 }
  0x3a   :  { %359 = vmatprep.subr.bf16.mxu0 %v523_v0  ;;  %379 = vmatprep.subr.bf16.mxu1 %v523_v0  ;;  %v420_v12 = vld [vmem:[#allocation7 + $0x20] sm:$0xff]   ;;  %v414_v13 = vld [vmem:[#allocation5 + $0x38] sm:$0xff]   ;;  %v421_v14 = vld [vmem:[#allocation7 + $0x28] sm:$0xff]  }
  0x3b   :  { %v415_v15 = vld [vmem:[#allocation2] sm:$0xff]   ;;  %v422_v16 = vld [vmem:[#allocation7 + $0x30] sm:$0xff]  }
  0x3c   :  { %v423_v17 = vld [vmem:[#allocation7 + $0x38] sm:$0xff]  }
  0x3d   :  { %360 = vmatpush3.bf16.msra.mxu0 %v408_v2  ;;  %380 = vmatpush3.bf16.msra.mxu1 %v417_v6  ;;  %v320_v18 = vld [vmem:[%s630_s2] ss:$0 sm:$0xff]  ;;  %s490_s2 = scalar_lea.vmem %s308_s8, 256 }
  0x3e   :  { %361 = vmatprep.subr.bf16.mxu0 %v523_v0  ;;  %381 = vmatprep.subr.bf16.mxu1 %v523_v0  ;;  %v330_v28 = vld [vmem:[%s632_s4] ss:$0 sm:$0xff]  ;;  %p491_p10 = scmp.ne.s32.totalorder %s308_s8, %s490_s2  ;;  %p496_p12 = scmp.lt.s32.totalorder %s490_s2, %s490_s2 }
  0x40   :  { %p497_p13 = por %p496_p12, %p495_p11 }
  0x41   :  { %362 = vmatpush3.bf16.msra.mxu0 %v409_v3  ;;  %382 = vmatpush3.bf16.msra.mxu1 %v418_v8 }
  0x42   :  { %363 = vmatprep.subr.bf16.mxu0 %v523_v0  ;;  %383 = vmatprep.subr.bf16.mxu1 %v523_v0  ;;  %p498_p0 = pnand %p497_p13, %p491_p10 }
  0x45   :  { %364 = vmatpush3.bf16.msra.mxu0 %v410_v5  ;;  %384 = vmatpush3.bf16.msra.mxu1 %v419_v10 }
  0x46   :  { %365 = vmatprep.subr.bf16.mxu0 %v523_v0  ;;  %385 = vmatprep.subr.bf16.mxu1 %v523_v0 }
  0x49   :  { %366 = vmatpush3.bf16.msra.mxu0 %v411_v7  ;;  %386 = vmatpush3.bf16.msra.mxu1 %v420_v12 }
  0x4a   :  { %367 = vmatprep.subr.bf16.mxu0 %v523_v0  ;;  %387 = vmatprep.subr.bf16.mxu1 %v523_v0 }
  0x4d   :  { %368 = vmatpush3.bf16.msra.mxu0 %v412_v9  ;;  %388 = vmatpush3.bf16.msra.mxu1 %v421_v14 }
  0x4e   :  { %369 = vmatprep.subr.bf16.mxu0 %v523_v0  ;;  %389 = vmatprep.subr.bf16.mxu1 %v523_v0 }
  0x51   :  { %370 = vmatpush3.bf16.msra.mxu0 %v413_v11  ;;  %390 = vmatpush3.bf16.msra.mxu1 %v422_v16 }
  0x52   :  { %371 = vmatprep.subr.bf16.mxu0 %v523_v0  ;;  %391 = vmatprep.subr.bf16.mxu1 %v523_v0 }
  0x55   :  { %372 = vmatpush3.bf16.msra.mxu0 %v414_v13  ;;  %392 = vmatpush3.bf16.msra.mxu1 %v423_v17 }
  0x58   :  { %374 = vmatmul.mubr.bf16.vlgmr.msra.gmra.mrb[0].mxu0 %v415_v15 }
 0x12b   :  { %v176_v19 = vpop.f32.mrb[0].mxu0 }
 0x12c   :  { %v177_v20 = vadd.f32 %v320_v18, %v176_v19  ;;  %v375_v21 = vpop.f32.mrb[1].mxu0 }
 0x12d   :  { %v179_v22 = vpop.f32.mrb[2].mxu0 }
 0x12e   :  { %v180_v23 = vadd.f32 %v320_v18, %v179_v22  ;;  %v376_v24 = vpop.f32.mrb[3].mxu0  ;;  %v183_v25 = vmax.f32 %v177_v20, 0.0 }
 0x130   :  { %v184_v26 = vmax.f32 %v180_v23, 0.0 }
 0x132   :  { %v185_v27 = vpack.c.bf16 %v184_v26, %v183_v25 }
 0x134   :  { %394 = vmatmul.mubr.bf16.vlgmr.msra.gmra.mrb[0].mxu1 %v185_v27 }
 0x207   :  { %v291_v29 = vpop.f32.mrb[0].mxu1 }
 0x208   :  { %v292_v30 = vadd.f32 %v330_v28, %v291_v29  ;;  %v395_v31 = vpop.f32.mrb[1].mxu1 }
 0x209   :  { %v294_v32 = vpop.f32.mrb[2].mxu1 }
 0x20a   :  { %v298_v33 = vmax.f32 %v292_v30, 0.0  ;;  %v295_v34 = vadd.f32 %v330_v28, %v294_v32  ;;  %v396_v35 = vpop.f32.mrb[3].mxu1 }
 0x20c   :  { %300 = vst [vmem:[#allocation8] sm:$0xff] %v298_v33  ;;  %v299_v36 = vmax.f32 %v295_v34, 0.0 }
 0x20e   :  { %301 = vst [vmem:[#allocation8 + $0x8] sm:$0xff] %v299_v36 }
 0x20f   :  { %501 = shalt.err (!%p498_p0)
}
 0x210   :  { %s502_s10 = scalar_lea.hbm %s633_s5, 256 }
 0x211   :  { %p503_p1 = scmp.ne.s32.totalorder %s633_s5, %s502_s10  ;;  %p506_p2 = scmp.lt.u32.totalorder %s502_s10, %s633_s5 }
 0x213   :  { %p508_p3 = pnand %p506_p2, %p503_p1 }
 0x215   :  { %511 = shalt.err (!%p508_p3)
}
 0x216   :  { %s526_s15 = smov 128   ;;  %s527_s16 = smov 8  }
 0x217   :  { %313 = dma.vmem_to_hbm [thread:$0]  %s308_s8, 256, %s633_s5, [#allocation4], %s526_s15, %s526_s15, %s527_s16  }
 0x218   :  { %516 = dma.done.wait [#allocation4], 256  }
 0x219   :  { %517 = vsyncadd [#allocation4], 4294967040 }
 0x21a   :  { %317 = vsyncpa [#allocation3], 1 }
 0x21b   :  { %318 = vsyncpa [#allocation6], 1 }
 0x21c   :  { %319 = vsyncpa [#allocation4], 1 }

</bundles_post_ra>
